<compile_context>
chip_gen: v5e
topology: v5e:2x2
jax: 0.10.0
libtpu: 0.0.40
codegen_flags: <defaults>
</compile_context>

<pallas_src>
import functools

import jax
import jax.numpy as jnp
from jax.experimental import pallas as pl
from jax.experimental.pallas import tpu as pltpu


def _bfdice_kernel(p_ref, t_ref, out_ref, *, dhw, t_chunk, n_chunks, gamma,
                   has_tail):
    """Accumulate [sum(x*y), sum(x), sum(y), sum(bce), sum(focal)] per class.

    p_ref/t_ref blocks: (1, C, T) logits / targets for one sample.
    out_ref block: (1, 5, C) -- stays resident in VMEM across the chunk axis
    (same block index for every ti) and is used directly as the accumulator.
    """
    ti = pl.program_id(1)

    @pl.when(ti == 0)
    def _init():
        out_ref[...] = jnp.zeros_like(out_ref)

    x = p_ref[0].astype(jnp.float32)   # (C, T) logits
    y = t_ref[0].astype(jnp.float32)   # (C, T) targets

    prod = x * y
    e = jnp.exp(-jnp.abs(x))                              # single exp / element
    # PyTorch-stable BCE-with-logits: max(x,0) - x*y + log(1 + exp(-|x|))
    bce = jnp.maximum(x, 0.0) - prod + jnp.log1p(e)
    # 1 - sigmoid(x) = e^{-x} / (1 + e^{-x}), rebuilt from e = exp(-|x|).
    one_minus_p = jnp.where(x >= 0.0, e, 1.0) / (1.0 + e)

    g = float(gamma)
    if g.is_integer() and g >= 1:
        focal = one_minus_p
        for _ in range(int(g) - 1):                       # gamma=2 -> one mul
            focal = focal * one_minus_p
    else:
        focal = one_minus_p ** gamma

    terms = (prod, x, y, bce, focal)

    def _accumulate(mask):
        parts = []
        for v in terms:
            if mask is not None:
                v = jnp.where(mask, v, 0.0)
            parts.append(jnp.sum(v, axis=-1))             # (C,) lane reduce
        out_ref[0] += jnp.stack(parts, axis=0)            # tiny (5, C) update

    if has_tail:
        is_last = ti == n_chunks - 1

        @pl.when(is_last)
        def _tail():
            lane = jax.lax.broadcasted_iota(jnp.int32, x.shape, 1)
            _accumulate((ti * t_chunk + lane) < dhw)

        @pl.when(jnp.logical_not(is_last))
        def _body():
            _accumulate(None)
    else:
        _accumulate(None)


def bf_dice_loss(pred, target, *, num_classes=None, gamma=2, smooth=1e-07,
                 max_chunk_elems=None, vmem_budget_bytes=16 * 1024 * 1024):
    """JAX/Pallas equivalent of BFDiceLoss.forward(pred, target)."""
    n, c, d, h, w = pred.shape
    if num_classes is None:
        num_classes = c
    if num_classes < c:
        # The PyTorch module silently ignores trailing classes; only stream
        # the classes we actually reduce.
        pred = pred[:, :num_classes]
        target = target[:, :num_classes]
        c = num_classes
    dhw = d * h * w

    p3 = pred.reshape(n, c, dhw)       # free: collapses trailing dims only
    t3 = target.reshape(n, c, dhw)

    # Chunk length along DHW: as big as possible while the 2 inputs x 2-deep
    # double buffers (each sublane-padded to a multiple of 8 class rows) fit
    # the VMEM budget.  No vector scratch is needed anymore.
    c_pad = -(-c // 8) * 8
    p_bytes = jnp.dtype(p3.dtype).itemsize
    t_bytes = jnp.dtype(t3.dtype).itemsize
    bytes_per_lane = 2 * c_pad * (p_bytes + t_bytes)      # 2 buffers per input
    t_chunk = max(128, (vmem_budget_bytes // bytes_per_lane) // 128 * 128)
    if max_chunk_elems is not None:
        t_chunk = max(128, (int(max_chunk_elems) // 128) * 128)
    if dhw <= t_chunk:
        t_chunk, n_chunks = dhw, 1
    else:
        n_chunks = pl.cdiv(dhw, t_chunk)
    has_tail = (dhw % t_chunk) != 0

    kernel = functools.partial(
        _bfdice_kernel, dhw=dhw, t_chunk=t_chunk, n_chunks=n_chunks,
        gamma=gamma, has_tail=has_tail)

    total_elems = n * c * dhw
    cost = pl.CostEstimate(
        flops=12 * total_elems,
        transcendentals=2 * total_elems,
        bytes_accessed=int(p3.size * p3.dtype.itemsize
                           + t3.size * t3.dtype.itemsize
                           + n * 5 * c * 4),
    )

    per_sample = pl.pallas_call(
        kernel,
        out_shape=jax.ShapeDtypeStruct((n, 5, c), jnp.float32),
        grid_spec=pltpu.PrefetchScalarGridSpec(
            num_scalar_prefetch=0,
            grid=(n, n_chunks),
            in_specs=[
                pl.BlockSpec((1, c, t_chunk), lambda ni, ti: (ni, 0, ti)),
                pl.BlockSpec((1, c, t_chunk), lambda ni, ti: (ni, 0, ti)),
            ],
            out_specs=pl.BlockSpec((1, 5, c), lambda ni, ti: (ni, 0, 0)),
        ),
        compiler_params=pltpu.CompilerParams(
            dimension_semantics=("parallel", "arbitrary"),
            vmem_limit_bytes=32 * 1024 * 1024),
        cost_estimate=cost,
    )(p3, t3)

    # Tiny final combine in plain JAX (per-class dice + focal-BCE, then sum).
    tot = jnp.sum(per_sample, axis=0)                    # (5, C) global sums
    m = jnp.float32(n * dhw)                             # elements per class
    dice = (2.0 * tot[0] + smooth) / (tot[1] + tot[2] + smooth)
    per_class = (1.0 - dice) + (tot[3] / m) * (tot[4] / m)
    return jnp.sum(per_class)


def _reference_loss(pred, target, gamma=2, smooth=1e-07):
    """Plain-JAX reference mirroring the PyTorch forward exactly."""
    pred = pred.astype(jnp.float32)
    target = target.astype(jnp.float32)
    c = pred.shape[1]
    total = jnp.float32(0.0)
    for class_ in range(c):
        x = pred[:, class_].reshape(-1)
        y = target[:, class_].reshape(-1)
        inter = jnp.sum(x * y)
        dice = (2.0 * inter + smooth) / (jnp.sum(x) + jnp.sum(y) + smooth)
        bce = jnp.mean(jnp.maximum(x, 0.0) - x * y + jnp.log1p(jnp.exp(-jnp.abs(x))))
        focal = jnp.mean((1.0 - jax.nn.sigmoid(x)) ** gamma)
        total = total + (1.0 - dice) + bce * focal
    return total


if __name__ == "__main__":
    # Small shapes consistent with the module: 5-D (N, C, D, H, W) volumes.
    N, C, D, H, W = 2, 4, 8, 8, 8
    key = jax.random.PRNGKey(0)
    k_pred, k_tgt = jax.random.split(key)
    pred = jax.random.normal(k_pred, (N, C, D, H, W), dtype=jnp.float32)
    target = (jax.random.uniform(k_tgt, (N, C, D, H, W)) > 0.5).astype(jnp.float32)

    ref = jax.block_until_ready(_reference_loss(pred, target, gamma=2))

    # Default path (single large chunk per sample).
    loss = jax.block_until_ready(bf_dice_loss(pred, target, num_classes=C, gamma=2))
    assert jnp.allclose(loss, ref, rtol=1e-5, atol=1e-5), (loss, ref)

    # Force multiple chunks + a ragged masked tail to exercise that path too.
    loss2 = jax.block_until_ready(
        bf_dice_loss(pred, target, num_classes=C, gamma=2, max_chunk_elems=384))
    assert jnp.allclose(loss2, ref, rtol=1e-5, atol=1e-5), (loss2, ref)

    print("KERNEL_OK")
</pallas_src>

<mosaic_0001>
module attributes {stable_mosaic.version = 11 : i64} {
  func.func @_bfdice_kernel(%arg0: i32, %arg1: i32, %arg2: memref<1x4x512xf32, #tpu.memory_space<vmem>>, %arg3: memref<1x4x512xf32, #tpu.memory_space<vmem>>, %arg4: memref<1x5x4xf32, #tpu.memory_space<vmem>>) attributes {dimension_semantics = [#tpu.dimension_semantics<parallel>, #tpu.dimension_semantics<arbitrary>], iteration_bounds = array<i64: 2, 1>, scalar_prefetch = 0 : i64, scratch_operands = 0 : i64, tpu.core_type = #tpu.core_type<tc>, window_params = [{transform_indices = @transform_0, window_bounds = array<i64: 1, 4, 512>}, {transform_indices = @transform_1, window_bounds = array<i64: 1, 4, 512>}, {transform_indices = @transform_2, window_bounds = array<i64: 1, 5, 4>}]} {
    %c0_i32 = arith.constant 0 : i32
    %0 = arith.cmpi eq, %arg1, %c0_i32 : i32
    %1 = arith.extui %0 : i1 to i32
    %c0_i32_0 = arith.constant 0 : i32
    %2 = arith.cmpi ne, %1, %c0_i32_0 : i32
    scf.if %2 {
      %cst_21 = arith.constant 0.000000e+00 : f32
      %42 = vector.broadcast %cst_21 : f32 to vector<1x5x4xf32>
      %c0_22 = arith.constant 0 : index
      %c0_23 = arith.constant 0 : index
      %c0_24 = arith.constant 0 : index
      %43 = vector.load %arg4[%c0_22, %c0_23, %c0_24] : memref<1x5x4xf32, #tpu.memory_space<vmem>>, vector<1x5x4xf32>
      tpu.vector_store %arg4[%c0_22, %c0_23, %c0_24], %42 {strides = array<i32>} : memref<1x5x4xf32, #tpu.memory_space<vmem>>, vector<1x5x4xf32>,
    } else {
    }
    %c0 = arith.constant 0 : index
    %c0_1 = arith.constant 0 : index
    %c0_2 = arith.constant 0 : index
    %3 = vector.load %arg2[%c0, %c0_1, %c0_2] : memref<1x4x512xf32, #tpu.memory_space<vmem>>, vector<1x4x512xf32>
    %4 = vector.shape_cast %3 : vector<1x4x512xf32> to vector<4x512xf32>
    %c0_3 = arith.constant 0 : index
    %c0_4 = arith.constant 0 : index
    %c0_5 = arith.constant 0 : index
    %5 = vector.load %arg3[%c0_3, %c0_4, %c0_5] : memref<1x4x512xf32, #tpu.memory_space<vmem>>, vector<1x4x512xf32>
    %6 = vector.shape_cast %5 : vector<1x4x512xf32> to vector<4x512xf32>
    %7 = arith.mulf %4, %6 : vector<4x512xf32>
    %8 = math.absf %4 : vector<4x512xf32>
    %cst = arith.constant 0.000000e+00 : f32
    %9 = vector.broadcast %cst : f32 to vector<4x512xf32>
    %10 = arith.subf %9, %8 : vector<4x512xf32>
    %11 = math.exp %10 : vector<4x512xf32>
    %cst_6 = arith.constant 0.000000e+00 : f32
    %12 = vector.broadcast %cst_6 : f32 to vector<4x512xf32>
    %13 = arith.maximumf %4, %12 : vector<4x512xf32>
    %14 = arith.subf %13, %7 : vector<4x512xf32>
    %15 = math.log1p %11 : vector<4x512xf32>
    %16 = arith.addf %14, %15 : vector<4x512xf32>
    %cst_7 = arith.constant 0.000000e+00 : f32
    %17 = vector.broadcast %cst_7 : f32 to vector<4x512xf32>
    %18 = arith.cmpf oge, %4, %17 : vector<4x512xf32>
    %cst_8 = arith.constant 1.000000e+00 : f32
    %19 = vector.broadcast %cst_8 : f32 to vector<4x512xf32>
    %20 = arith.select %18, %11, %19 : vector<4x512xi1>, vector<4x512xf32>
    %cst_9 = arith.constant 1.000000e+00 : f32
    %21 = vector.broadcast %cst_9 : f32 to vector<4x512xf32>
    %22 = arith.addf %21, %11 : vector<4x512xf32>
    %23 = arith.divf %20, %22 : vector<4x512xf32>
    %24 = arith.mulf %23, %23 : vector<4x512xf32>
    %cst_10 = arith.constant dense<0.000000e+00> : vector<4xf32>
    %25 = vector.multi_reduction <add>, %7, %cst_10 [1] : vector<4x512xf32> to vector<4xf32>
    %cst_11 = arith.constant dense<0.000000e+00> : vector<4xf32>
    %26 = vector.multi_reduction <add>, %4, %cst_11 [1] : vector<4x512xf32> to vector<4xf32>
    %cst_12 = arith.constant dense<0.000000e+00> : vector<4xf32>
    %27 = vector.multi_reduction <add>, %6, %cst_12 [1] : vector<4x512xf32> to vector<4xf32>
    %cst_13 = arith.constant dense<0.000000e+00> : vector<4xf32>
    %28 = vector.multi_reduction <add>, %16, %cst_13 [1] : vector<4x512xf32> to vector<4xf32>
    %cst_14 = arith.constant dense<0.000000e+00> : vector<4xf32>
    %29 = vector.multi_reduction <add>, %24, %cst_14 [1] : vector<4x512xf32> to vector<4xf32>
    %c0_15 = arith.constant 0 : index
    %c0_16 = arith.constant 0 : index
    %c0_17 = arith.constant 0 : index
    %30 = vector.load %arg4[%c0_15, %c0_16, %c0_17] : memref<1x5x4xf32, #tpu.memory_space<vmem>>, vector<1x5x4xf32>
    %31 = vector.shape_cast %30 : vector<1x5x4xf32> to vector<5x4xf32>
    %32 = vector.shape_cast %25 : vector<4xf32> to vector<1x4xf32>
    %33 = vector.shape_cast %26 : vector<4xf32> to vector<1x4xf32>
    %34 = vector.shape_cast %27 : vector<4xf32> to vector<1x4xf32>
    %35 = vector.shape_cast %28 : vector<4xf32> to vector<1x4xf32>
    %36 = vector.shape_cast %29 : vector<4xf32> to vector<1x4xf32>
    %37 = tpu.concatenate %32, %33, %34, %35, %36 in 0 : vector<1x4xf32>, vector<1x4xf32>, vector<1x4xf32>, vector<1x4xf32>, vector<1x4xf32> -> vector<5x4xf32>
    %38 = arith.addf %31, %37 : vector<5x4xf32>
    %c0_18 = arith.constant 0 : index
    %c0_19 = arith.constant 0 : index
    %c0_20 = arith.constant 0 : index
    %39 = vector.load %arg4[%c0_18, %c0_19, %c0_20] : memref<1x5x4xf32, #tpu.memory_space<vmem>>, vector<1x5x4xf32>
    %40 = vector.shape_cast %39 : vector<1x5x4xf32> to vector<5x4xf32>
    %41 = vector.shape_cast %38 : vector<5x4xf32> to vector<1x5x4xf32>
    tpu.vector_store %arg4[%c0_18, %c0_19, %c0_20], %41 {strides = array<i32>} : memref<1x5x4xf32, #tpu.memory_space<vmem>>, vector<1x5x4xf32>,
    return
  }
  func.func @transform_0(%arg0: i32, %arg1: i32) -> (i32, i32, i32) {
    %c0_i32 = arith.constant 0 : i32
    %c0_i32_0 = arith.constant 0 : i32
    return %arg0, %c0_i32, %arg1 : i32, i32, i32
  }
  func.func @transform_1(%arg0: i32, %arg1: i32) -> (i32, i32, i32) {
    %c0_i32 = arith.constant 0 : i32
    %c0_i32_0 = arith.constant 0 : i32
    return %arg0, %c0_i32, %arg1 : i32, i32, i32
  }
  func.func @transform_2(%arg0: i32, %arg1: i32) -> (i32, i32, i32) {
    %c0_i32 = arith.constant 0 : i32
    %c0_i32_0 = arith.constant 0 : i32
    %c0_i32_1 = arith.constant 0 : i32
    return %arg0, %c0_i32, %c0_i32_0 : i32, i32, i32
  }
}

</mosaic_0001>

<bundles_post_ra>
// kernel: tpu_custom_call.1
= control target key start
LH: loop header
LB: loop body
LE: loop exit
PB: predicated region body
PF: predicated region fallthrough
CT: control target
= control target key end

     0   :  { %7 = vsyncpa [#allocation3], 0  ;;  %s970_s0 = inlined_call_operand.hbm [shape: f32[2,4,512], index: 0, kind: input, shape index: {}]   ;;  %s971_s1 = inlined_call_operand.hbm [shape: f32[2,4,512], index: 1, kind: input, shape index: {}]   ;;  %s972_s2 = inlined_call_operand.vmem [shape: f32[2,5,4], index: 2, kind: output, shape index: {}]  }
   0x1   :  { %9 = vsyncpa [#allocation3 + $0x1], 0 }
   0x2   :  { %10 = vsyncpa [#allocation5], 0 }
   0x3   :  { %12 = vsyncpa [#allocation5 + $0x1], 0  ;;  %s770_s9 = smov 0   ;;  %s772_s10 = smov 0  }
   0x4   :  { %s774_s11 = smov 0   ;;  %s776_s12 = smov 0  }
   0x5   :  { %s778_s13 = smov 0   ;;  %s780_s14 = smov 0  }
   0x6 LB: > { %s547_s15 = sadd.s32 4294967295, %s752_s14   ;;  %s30_s16 = sadd.s32 1, %s748_s13  ;;  %s752_s14 = sphi %s780_s14, %s18_s14   ;;  %s748_s13 = sphi %s778_s13, %s989_s13   ;;  %s744_s12 = sphi %s776_s12, %s988_s12   ;;  %s740_s11 = sphi %s774_s11, %s987_s11   ;;  %s736_s10 = sphi %s772_s10, %s986_s10   ;;  %s732_s9 = sphi %s770_s9, %s985_s9  }
   0x7   : > { %p32_p0 = scmp.ge.s32.totalorder %s30_s16, 2  ;;  %s39_s17 = sadd.s32 1, %s740_s11 }
   0x8   : > { %p46_p1 = scmp.ne.s32.totalorder %s740_s11, %s736_s10  ;;  %p47_p2 = scmp.eq.s32.totalorder %s752_s14, 0 }
   0x9   : > { %s991_s16 = smov (%p32_p0, %s30_s16), 0  ;;  %p52_p4 = scmp.ne.s32.totalorder %s736_s10, %s732_s9 }
   0xa   : > { %p806_p3 = por %p47_p2, %p46_p1  ;;  %s34_s19 = ssub.s32 %s748_s13, %s991_s16 }
   0xb   : > { %p53_p5 = scmp.eq.s32.totalorder %s547_s15, 0  ;;  %p37_p6 = scmp.eq.s32.totalorder %s34_s19, 0 }
   0xc   : > { %p576_p8 = scmp.lt.s32.totalorder %s752_s14, 2  ;;  %s130_s22 = sand.u32 1, %s740_s11  }
   0xd   : > { %p813_p7 = por %p53_p5, %p52_p4  ;;  %s563_s23 = sshll.u32 %s748_s13, 4 }
   0xe   : > { %s819_s21 = scalar_select %p37_p6, %s740_s11, %s39_s17  }
   0xf   : > { %s551_s24 = sshll.u32 %s130_s22, 4  ;;  %s141_s27 = scalar_lea.hbm %s970_s0, %s563_s23 }
  0x10   : > { %s143_s28 = sshll.u32 %s141_s27, 4  ;;  %s134_s29 = scalar_lea.vmem [#allocation2], %s551_s24  ;;  %s144_s28 = int_to_ptr.hbm [resolvable:$true] %s143_s28 }
  0x11   : > { %s145_s30 = sshll.u32 %s134_s29, 4  ;;  %p570_p9 = pnand %p576_p8, %p806_p3  ;;  %s146_s30 = int_to_ptr.vmem [resolvable:$true] %s145_s30 }
  0x12   : > { %p557_p10 = scmp.ge.s32.totalorder %s752_s14, 1  ;;  %p172_p11 = scmp.lt.s32.totalorder %s752_s14, 3 }
  0x13   : > { %s131_s3 = scalar_lea.sflag [#allocation3], %s130_s22  ;;  %s163_s6 = scalar_lea.hbm %s971_s1, %s563_s23 }
  0x14   : > { %572 = dma.hbm_to_vmem [thread:$0]  (!%p570_p9), %s144_s28, 256, %s146_s30, %s131_s3  }
  0x15   : > { %p173_p12 = pnand %p557_p10, %p172_p11  ;;  %s165_s7 = sshll.u32 %s163_s6, 4  ;;  %s166_s7 = int_to_ptr.hbm [resolvable:$true] %s165_s7 }
  0x16   : > { %s156_s8 = scalar_lea.vmem [#allocation4], %s551_s24  ;;  %s153_s15 = scalar_lea.sflag [#allocation5], %s130_s22 }
  0x17   : > { %s167_s9 = sshll.u32 %s156_s8, 4  ;;  %176 = sbr.rel (%p173_p12) target bundleno = 209 (0xd1), region = 28  ;;  %s168_s9 = int_to_ptr.vmem [resolvable:$true] %s167_s9 }
  0x18   : > { %575 = dma.hbm_to_vmem [thread:$0]  (!%p570_p9), %s166_s7, 256, %s168_s9, %s153_s15  }
  0x19   : > { %s178_s17 = sand.u32 (!%p173_p12), 1, %s736_s10  }
  0x1a   : > { %s558_s18 = sshll.u32 (!%p173_p12), %s178_s17, 4  ;;  %s179_s19 = scalar_lea.sflag (!%p173_p12), [#allocation3], %s178_s17 }
  0x1b   : > { %s182_s25 = scalar_lea.vmem (!%p173_p12), [#allocation2], %s558_s18 }
  0x1c   : > { %723 = dma.done.wait (%p813_p7), %s179_s19, 256  }
  0x1d   : > { %725 = vsyncadd (%p813_p7), %s179_s19, 4294967040  ;;  %s189_s23 = scalar_lea.sflag [#allocation5], %s178_s17  ;;  %s192_s24 = scalar_lea.vmem [#allocation4], %s558_s18 }
  0x1e   : > { %727 = dma.done.wait (%p813_p7), %s189_s23, 256  }
  0x1f   : > { %729 = vsyncadd (%p813_p7), %s189_s23, 4294967040  ;;  %v842_v0 = vld [vmem:[%s182_s25] sm:$0xff]  ;;  %v844_v1 = vld [vmem:[%s182_s25 + $0x8] sm:$0xff]  ;;  %vm319_vm0 = vcmask 1043456   ;;  %p220_p13 = scmp.lt.s32.totalorder %s744_s12, 1  ;;  %vm228_vm13 = vcmask 28672  }
  0x20   : > { %v232_v2 = vld [vmem:[%s192_s24] sm:$0xff]  ;;  %v233_v3 = vld [vmem:[%s192_s24 + $0x8] sm:$0xff]  ;;  %v236_v5 = vand.u32 2147483647, %v842_v0  ;;  %v237_v6 = vand.u32 2147483647, %v844_v1 }
  0x21   : > { %v234_v4 = vmul.f32 %v232_v2, %v842_v0  ;;  %v235_v7 = vmul.f32 %v233_v3, %v844_v1  ;;  %v244_v26 = vmax.f32 %v842_v0, 0.0  ;;  %v245_v29 = vmax.f32 %v844_v1, 0.0  ;;  %s993_s12 = smov (!%p220_p13, %s744_s12), 1 }
  0x22   : > { %v238_v8 = vsub.f32 0.0, %v236_v5  ;;  %v239_v9 = vsub.f32 0.0, %v237_v6  ;;  %vm268_vm2 = vcmp.ge.f32.partialorder %v842_v0, 0.0  ;;  %vm269_vm3 = vcmp.ge.f32.partialorder %v844_v1, 0.0  ;;  %s560_s20 = sshll.u32 %s993_s12, 3 }
  0x23   : > { %308 = vst [vmem:[#allocation1] ss:$2 sm:$0xff] %v234_v4  ;;  %v246_v40 = vsub.f32 %v244_v26, %v234_v4  ;;  %v247_v48 = vsub.f32 %v245_v29, %v235_v7  ;;  %s223_s27 = scalar_lea.vmem %s972_s2, %s560_s20  ;;  %vm435_vm14 = vcmask 1040384   ;;  %vm437_vm15 = vcmask 1041408  }
  0x24   : > { %310 = vst [vmem:[#allocation1 + $0x10] ss:$2 sm:$0xff] %v235_v7  ;;  %v240_v10 = vmul.f32 1.442695, %v238_v8  ;;  %v242_v11 = vmul.f32 1.442695, %v239_v9 }
  0x26   : > { %626 = vpow2.f32 %v240_v10 }
  0x27   : > { %628 = vpow2.f32 %v242_v11 }
  0x2a   : > { %v311_v12 = vld.sshfl [vmem:[#allocation1] sm:$0xff pattern:$0x75316420]  ;;  %v312_v13 = vld.sshfl [vmem:[#allocation1 + $0x8] sm:$0xff pattern:$0x75316420] }
  0x2b   : > { %v313_v14 = vld.sshfl [vmem:[#allocation1 + $0x10] sm:$0xff pattern:$0x75316420]  ;;  %v314_v15 = vld.sshfl [vmem:[#allocation1 + $0x18] sm:$0xff pattern:$0x75316420] }
  0x2c   : > { %331 = vst [vmem:[#allocation1] ss:$2 sm:$0xff] %v842_v0  ;;  %v851_v16 = vpop.eup %626  ;;  %v320_v17 = vsel %vm319_vm0, %v311_v12, 0.0  ;;  %v321_v18 = vsel %vm319_vm0, %v312_v13, 0.0  ;;  %v323_v28 = vsel %vm319_vm0, %v313_v14, 0.0  ;;  %v325_v32 = vsel %vm319_vm0, %v314_v15, 0.0 }
  0x2d   : > { %333 = vst [vmem:[#allocation1 + $0x10] ss:$2 sm:$0xff] %v844_v1  ;;  %v856_v19 = vpop.eup %628  ;;  %v859_v20 = vadd.f32 1.0, %v851_v16  ;;  %v251_v21 = vmul.f32 -0.5, %v851_v16  ;;  %v254_v24 = vand.u32 2147483647, %v851_v16  ;;  %v322_v25 = vadd.f32 %v321_v18, %v320_v17 }
  0x2e   : > { %v863_v22 = vadd.f32 1.0, %v856_v19  ;;  %v260_v23 = vmul.f32 -0.5, %v856_v19  ;;  %v263_v31 = vand.u32 2147483647, %v856_v19 }
  0x2f   : > { %630 = vlog2.f32 %v859_v20  ;;  %v252_v27 = vadd.f32 1.0, %v251_v21  ;;  %vm876_vm1 = vcmp.lt.f32.partialorder %v254_v24, 0.0004427343  ;;  %v324_v35 = vadd.f32 %v323_v28, %v322_v25 }
  0x30   : > { %632 = vlog2.f32 %v863_v22  ;;  %v261_v30 = vadd.f32 1.0, %v260_v23  ;;  %vm887_vm4 = vcmp.lt.f32.partialorder %v263_v31, 0.0004427343  ;;  %vm279_vm5 = vweird.f32 %v859_v20 }
  0x31   : > { %634 = vrcp.f32 %v859_v20  ;;  %v253_v38 = vmul.f32 %v851_v16, %v252_v27  ;;  %v326_v43 = vadd.f32 %v325_v32, %v324_v35  ;;  %v283_v54 = vand.u32 2147483647, %v859_v20 }
  0x32   : > { %636 = vrcp.f32 %v863_v22  ;;  %v262_v42 = vmul.f32 %v856_v19, %v261_v30  ;;  %v285_v55 = vand.u32 2147483648, %v859_v20  ;;  %vm294_vm6 = vweird.f32 %v863_v22 }
  0x33   : > { %v334_v33 = vld.sshfl [vmem:[#allocation1] sm:$0xff pattern:$0x75316420]  ;;  %v335_v36 = vld.sshfl [vmem:[#allocation1 + $0x8] sm:$0xff pattern:$0x75316420]  ;;  %327 = vadd.xlane.f32.xlu0 %v326_v43 }
  0x34   : > { %v342_v37 = vsel %vm319_vm0, %v334_v33, 0.0  ;;  %v336_v39 = vld.sshfl [vmem:[#allocation1 + $0x10] sm:$0xff pattern:$0x75316420]  ;;  %353 = vst [vmem:[#allocation1] ss:$2 sm:$0xff] %v232_v2 }
  0x35   : > { %v631_v41 = vpop.eup %630  ;;  %v337_v44 = vld.sshfl [vmem:[#allocation1 + $0x18] sm:$0xff pattern:$0x75316420]  ;;  %v343_v45 = vsel %vm319_vm0, %v335_v36, 0.0  ;;  %v345_v46 = vsel %vm319_vm0, %v336_v39, 0.0  ;;  %v300_v4 = vand.u32 2147483648, %v863_v22 }
  0x36   : > { %v633_v47 = vpop.eup %632  ;;  %v250_v49 = vmul.f32 0.6931472, %v631_v41  ;;  %355 = vst [vmem:[#allocation1 + $0x10] ss:$2 sm:$0xff] %v233_v3  ;;  %v344_v51 = vadd.f32 %v343_v45, %v342_v37  ;;  %v347_v60 = vsel %vm319_vm0, %v337_v44, 0.0  ;;  %vm904_vm9 = vcmp.eq.f32.partialorder %v283_v54, 8.507059e+37 }
  0x37   : > { %v635_v52 = vpop.eup %634  ;;  %v259_v53 = vmul.f32 0.6931472, %v633_v47  ;;  %v298_v63 = vand.u32 2147483647, %v863_v22  ;;  %v286_v11 = vor.u32 1.1754944e-38, %v285_v55  ;;  %v301_v24 = vor.u32 1.1754944e-38, %v300_v4 }
  0x38   : > { %v637_v56 = vpop.eup %636  ;;  %v256_v57 = vsel %vm876_vm1, %v253_v38, %v250_v49  ;;  %v275_v58 = vmul.f32 %v635_v52, %v859_v20  ;;  %v346_v59 = vadd.f32 %v345_v46, %v344_v51  ;;  %vm280_vm7 = vweird.f32 %v635_v52 }
  0x39   : > { %v265_v61 = vsel %vm887_vm4, %v262_v42, %v259_v53  ;;  %v290_v62 = vmul.f32 %v637_v56, %v863_v22  ;;  %vm295_vm8 = vweird.f32 %v637_v56  ;;  %v266_v6 = vadd.f32 %v256_v57, %v246_v40  ;;  %vm911_vm10 = vmor %vm279_vm5, %vm280_vm7 }
  0x3a   : > { %v267_v2 = vadd.f32 %v265_v61, %v247_v48  ;;  %v276_v3 = vsub.f32 1.0, %v275_v58  ;;  %v348_v8 = vadd.f32 %v347_v60, %v346_v59  ;;  %vm917_vm11 = vmor %vm294_vm6, %vm295_vm8  ;;  %v270_v20 = vsel %vm268_vm2, %v851_v16, 1.0 }
  0x3b   : > { %v291_v5 = vsub.f32 1.0, %v290_v62  ;;  %v356_v7 = vld.sshfl [vmem:[#allocation1] sm:$0xff pattern:$0x75316420]  ;;  %vm299_vm12 = vcmp.eq.f32.partialorder %v298_v63, 8.507059e+37  ;;  %v271_v22 = vsel %vm269_vm3, %v856_v19, 1.0  ;;  %v419_v60 = vlaneseq }
  0x3c   : > { %v277_v9 = vmul.f32 %v635_v52, %v276_v3  ;;  %v357_v12 = vld.sshfl [vmem:[#allocation1 + $0x8] sm:$0xff pattern:$0x75316420]  ;;  %v364_v13 = vsel %vm319_vm0, %v356_v7, 0.0  ;;  %349 = vadd.xlane.f32.xlu0 %v348_v8  ;;  %v754_v58 = vmov 0.0   ;;  %vm439_vm1 = vcmask 1042432  }
  0x3d   : > { %v292_v15 = vmul.f32 %v637_v56, %v291_v5  ;;  %v358_v17 = vld.sshfl [vmem:[#allocation1 + $0x10] sm:$0xff pattern:$0x75316420]  ;;  %v359_v18 = vld.sshfl [vmem:[#allocation1 + $0x18] sm:$0xff pattern:$0x75316420] }
  0x3e   : > { %v278_v21 = vadd.f32 %v635_v52, %v277_v9  ;;  %v365_v25 = vsel %vm319_vm0, %v357_v12, 0.0  ;;  %v367_v26 = vsel %vm319_vm0, %v358_v17, 0.0  ;;  %377 = vst [vmem:[#allocation1 + $0x10] ss:$2 sm:$0xff] %v267_v2  ;;  %v369_v30 = vsel %vm319_vm0, %v359_v18, 0.0 }
  0x3f   : > { %v293_v27 = vadd.f32 %v637_v56, %v292_v15  ;;  %v366_v28 = vadd.f32 %v365_v25, %v364_v13  ;;  %375 = vst [vmem:[#allocation1] ss:$2 sm:$0xff] %v266_v6  ;;  %v420_v62 = vand.u32 127, %v419_v60 }
  0x40   : > { %v282_v29 = vsel %vm911_vm10, %v635_v52, %v278_v21  ;;  %229 = vst.msk [vmem:[%s223_s27] sm:$0x1f] %vm228_vm13, %v754_v58 }
  0x41   : > { %v287_v31 = vsel %vm904_vm9, %v286_v11, %v282_v29  ;;  %v297_v0 = vsel %vm917_vm11, %v637_v56, %v293_v27  ;;  %v368_v16 = vadd.f32 %v367_v26, %v366_v28 }
  0x42   : > { %v288_v32 = vmul.f32 %v287_v31, %v270_v20  ;;  %v302_v33 = vsel %vm299_vm12, %v301_v24, %v297_v0 }
  0x43   : > { %v303_v34 = vmul.f32 %v302_v33, %v271_v22  ;;  %v370_v35 = vadd.f32 %v369_v30, %v368_v16 }
  0x44   : > { %v304_v36 = vmul.f32 %v288_v32, %v288_v32 }
  0x45   : > { %v305_v37 = vmul.f32 %v303_v34, %v303_v34  ;;  %371 = vadd.xlane.f32.xlu1 %v370_v35  ;;  %v380_v1 = vld.sshfl [vmem:[#allocation1 + $0x10] sm:$0xff pattern:$0x75316420]  ;;  %v381_v19 = vld.sshfl [vmem:[#allocation1 + $0x18] sm:$0xff pattern:$0x75316420] }
  0x46   : > { %v378_v38 = vld.sshfl [vmem:[#allocation1] sm:$0xff pattern:$0x75316420]  ;;  %v379_v39 = vld.sshfl [vmem:[#allocation1 + $0x8] sm:$0xff pattern:$0x75316420] }
  0x47   : > { %v386_v40 = vsel %vm319_vm0, %v378_v38, 0.0  ;;  %v387_v41 = vsel %vm319_vm0, %v379_v39, 0.0  ;;  %v389_v42 = vsel %vm319_vm0, %v380_v1, 0.0  ;;  %397 = vst [vmem:[#allocation1] ss:$2 sm:$0xff] %v304_v36  ;;  %v391_v44 = vsel %vm319_vm0, %v381_v19, 0.0 }
  0x48   : > { %v388_v43 = vadd.f32 %v387_v41, %v386_v40  ;;  %399 = vst [vmem:[#allocation1 + $0x10] ss:$2 sm:$0xff] %v305_v37  ;;  %v417_v10 = vld [vmem:[%s223_s27] sm:$0x1f] }
  0x4a   : > { %v390_v45 = vadd.f32 %v389_v42, %v388_v43 }
  0x4c   : > { %v392_v46 = vadd.f32 %v391_v44, %v390_v45 }
  0x4e   : > { %393 = vadd.xlane.f32.xlu1 %v392_v46  ;;  %v400_v47 = vld.sshfl [vmem:[#allocation1] sm:$0xff pattern:$0x75316420]  ;;  %v401_v48 = vld.sshfl [vmem:[#allocation1 + $0x8] sm:$0xff pattern:$0x75316420] }
  0x4f   : > { %v402_v49 = vld.sshfl [vmem:[#allocation1 + $0x10] sm:$0xff pattern:$0x75316420]  ;;  %v403_v50 = vld.sshfl [vmem:[#allocation1 + $0x18] sm:$0xff pattern:$0x75316420] }
  0x50   : > { %v408_v51 = vsel %vm319_vm0, %v400_v47, 0.0  ;;  %v409_v52 = vsel %vm319_vm0, %v401_v48, 0.0  ;;  %v411_v53 = vsel %vm319_vm0, %v402_v49, 0.0  ;;  %v413_v55 = vsel %vm319_vm0, %v403_v50, 0.0 }
  0x51   : > { %v410_v54 = vadd.f32 %v409_v52, %v408_v51 }
  0x53   : > { %v412_v56 = vadd.f32 %v411_v53, %v410_v54 }
  0x55   : > { %v414_v57 = vadd.f32 %v413_v55, %v412_v56 }
  0x57   : > { %415 = vadd.xlane.f32.xlu2 %v414_v57 }
  0xa6   : > { %v328_v59 = vpop.xlane.xlu0 %327 }
  0xa7   : > { %v421_v2 = vperm.slane %v328_v59, %v420_v62 }
  0xaf   : > { %v350_v63 = vpop.xlane.xlu0 %349 }
  0xb0   : > { %v424_v3 = vperm.slane %v350_v63, %v420_v62 }
  0xb2   : > { %v436_v6 = vsel %vm435_vm14, %v421_v2, %v424_v3 }
  0xb8   : > { %v372_v61 = vpop.xlane.xlu1 %371 }
  0xb9   : > { %v427_v4 = vperm.slane %v372_v61, %v420_v62 }
  0xbb   : > { %v438_v8 = vsel %vm437_vm15, %v436_v6, %v427_v4 }
  0xc1   : > { %v394_v5 = vpop.xlane.xlu1 %393 }
  0xc2   : > { %v430_v7 = vperm.slane %v394_v5, %v420_v62 }
  0xc4   : > { %v440_v12 = vsel %vm439_vm1, %v438_v8, %v430_v7 }
  0xca   : > { %v416_v9 = vpop.xlane.xlu2 %415 }
  0xcb   : > { %v433_v11 = vperm.slane %v416_v9, %v420_v62 }
  0xcd   : > { %v441_v13 = vsel %vm319_vm0, %v440_v12, %v433_v11 }
  0xce   : > { %v442_v14 = vadd.f32 %v441_v13, %v417_v10 }
  0xd0   : > { %444 = vst.msk [vmem:[%s223_s27] sm:$0x1f] %vm228_vm13, %v442_v14 }
  0xd1 PF: > { %s18_s14 = sadd.s32 1, %s752_s14   ;;  %s985_s9 = smov %s736_s10 }
  0xd2   : > { %p15_p0 = scmp.ge.s32.totalorder %s18_s14, 4   ;;  %s986_s10 = smov %s740_s11 }
  0xd3   : > { %s987_s11 = smov %s819_s21  ;;  %s988_s12 = smov %s748_s13 }
  0xd4   : > { %s989_s13 = smov %s991_s16  ;;  %17 = sbr.rel (!%p15_p0) target bundleno = 6 (0x6), region = 90 }
  0xd9   :  { %464 = vsyncpa [#allocation3], 1 }
  0xda   :  { %466 = vsyncpa [#allocation3 + $0x1], 1 }
  0xdb   :  { %467 = vsyncpa [#allocation5], 1 }
  0xdc   :  { %469 = vsyncpa [#allocation5 + $0x1], 1 }

</bundles_post_ra>
